<compile_context>
chip_gen: v5e
topology: v5e:2x2
jax: 0.10.0
libtpu: 0.0.40
codegen_flags: <defaults>
</compile_context>

<pallas_src>
import functools

import jax
import jax.numpy as jnp
from jax.experimental import pallas as pl
from jax.experimental.pallas import tpu as pltpu


def _round_up(x, m):
    return ((x + m - 1) // m) * m


def actor_kernel(x_ref, w1_ref, b1_ref, w2_ref, b2_ref, w3_ref, b3_ref, o_ref,
                 *, scale, offset):
    # Feature-major layout:
    #   x_ref  : [state_dim, TILE_B]
    #   wK_ref : [out_features, in_features]   (resident across grid steps)
    #   bK_ref : [out_features, 1]             (lane-broadcast)
    #   o_ref  : [action_dim, TILE_B]          (lane-dense store)
    x = x_ref[...]
    h1 = jnp.dot(w1_ref[...], x, preferred_element_type=jnp.float32) + b1_ref[...]
    h1 = jnp.maximum(h1, 0.0)                                   # ReLU
    h2 = jnp.dot(w2_ref[...], h1, preferred_element_type=jnp.float32) + b2_ref[...]
    h2 = jnp.maximum(h2, 0.0)                                   # ReLU
    a = jnp.tanh(jnp.dot(w3_ref[...], h2, preferred_element_type=jnp.float32)
                 + b3_ref[...])                                 # Tanh
    # 0.5*(a+1)*(hi-lo)+lo  ==  a*scale + offset  with
    #   scale = 0.5*(hi-lo), offset = 0.5*(hi+lo)
    o_ref[...] = a * scale + offset


def actor_forward(state, params, *, action_high, action_low, tile_b=None):
    """state: [B, state_dim] float32. Returns [B, action_dim] float32."""
    w1, b1, w2, b2, w3, b3 = params
    B, state_dim = state.shape
    action_dim = w3.shape[1]

    # Batch tile: lane-dense (multiple of 128), large enough to amortize the
    # ~0.35 us/step grid overhead, small enough for every generation's VMEM.
    if tile_b is None:
        tile_b = min(8192, _round_up(max(B, 1), 128))
    assert tile_b % 128 == 0, "tile_b must be a multiple of 128 (lane width)"
    b_pad = _round_up(B, tile_b)

    # Wrapper-side layout plumbing (plain XLA ops, outside the kernel):
    # pad batch to a tile multiple and go feature-major.
    x_t = jnp.pad(state.astype(jnp.float32), ((0, b_pad - B), (0, 0))).T  # [state_dim, b_pad]
    w1t, w2t, w3t = w1.T, w2.T, w3.T          # [out, in]
    b1t, b2t, b3t = b1.T, b2.T, b3.T          # [out, 1]

    scale = 0.5 * (float(action_high) - float(action_low))
    offset = 0.5 * (float(action_high) + float(action_low))
    kernel = functools.partial(actor_kernel, scale=scale, offset=offset)

    def resident(shape):
        # Constant block index -> stays in VMEM across all grid steps.
        return pl.BlockSpec(shape, lambda i: (0, 0))

    out_t = pl.pallas_call(
        kernel,
        out_shape=jax.ShapeDtypeStruct((action_dim, b_pad), jnp.float32),
        grid=(b_pad // tile_b,),
        in_specs=[
            pl.BlockSpec((state_dim, tile_b), lambda i: (0, i)),   # streamed x tile
            resident(w1t.shape), resident(b1t.shape),
            resident(w2t.shape), resident(b2t.shape),
            resident(w3t.shape), resident(b3t.shape),
        ],
        out_specs=pl.BlockSpec((action_dim, tile_b), lambda i: (0, i)),
        compiler_params=pltpu.CompilerParams(
            dimension_semantics=("parallel",)),   # lets v7x shard over 2 TCs
    )(x_t, w1t, b1t, w2t, b2t, w3t, b3t)

    return out_t.T[:B]


def init_params(key, state_dim, hidden_dim, action_dim):
    """Deterministic PyTorch-style Linear init: U(-1/sqrt(fan_in), 1/sqrt(fan_in)).

    Weights stored [in_features, out_features], biases [1, out_features]
    (same convention as the original: forward computes x @ W + b).
    """
    ks = jax.random.split(key, 6)

    def linear(kw, kb, fan_in, fan_out):
        bound = 1.0 / jnp.sqrt(jnp.float32(fan_in))
        w = jax.random.uniform(kw, (fan_in, fan_out), jnp.float32, -bound, bound)
        b = jax.random.uniform(kb, (1, fan_out), jnp.float32, -bound, bound)
        return w, b

    w1, b1 = linear(ks[0], ks[1], state_dim, hidden_dim)
    w2, b2 = linear(ks[2], ks[3], hidden_dim, hidden_dim)
    w3, b3 = linear(ks[4], ks[5], hidden_dim, action_dim)
    return (w1, b1, w2, b2, w3, b3)


def reference_forward(state, params, *, action_high, action_low):
    w1, b1, w2, b2, w3, b3 = params
    h1 = jnp.maximum(state @ w1 + b1, 0.0)
    h2 = jnp.maximum(h1 @ w2 + b2, 0.0)
    a = jnp.tanh(h2 @ w3 + b3)
    return 0.5 * (a + 1.0) * (action_high - action_low) + action_low


if __name__ == "__main__":
    # Small config consistent with the module: state_dim=16, hidden_dim=32, action_dim=4.
    B, STATE_DIM, HIDDEN_DIM, ACTION_DIM = 8, 16, 32, 4
    ACTION_HIGH, ACTION_LOW = 2.0, -2.0

    key = jax.random.PRNGKey(0)
    k_params, k_state, k_state2 = jax.random.split(key, 3)

    params = init_params(k_params, STATE_DIM, HIDDEN_DIM, ACTION_DIM)
    state = jax.random.normal(k_state, (B, STATE_DIM), jnp.float32)

    out = actor_forward(state, params, action_high=ACTION_HIGH, action_low=ACTION_LOW)
    out = jax.block_until_ready(out)

    ref = reference_forward(state, params, action_high=ACTION_HIGH, action_low=ACTION_LOW)
    assert out.shape == (B, ACTION_DIM)
    assert jnp.allclose(out, ref, atol=1e-5, rtol=1e-5), "mismatch vs JAX reference (B=8)"
    assert bool(jnp.all(out <= ACTION_HIGH + 1e-5)) and bool(jnp.all(out >= ACTION_LOW - 1e-5))

    # Second check: non-multiple batch with a small tile to exercise the batch
    # grid (grid=(3,)), batch padding and the parallel dimension semantics.
    B2 = 300
    state2 = jax.random.normal(k_state2, (B2, STATE_DIM), jnp.float32)
    out2 = actor_forward(state2, params, action_high=ACTION_HIGH, action_low=ACTION_LOW,
                         tile_b=128)
    out2 = jax.block_until_ready(out2)
    ref2 = reference_forward(state2, params, action_high=ACTION_HIGH, action_low=ACTION_LOW)
    assert out2.shape == (B2, ACTION_DIM)
    assert jnp.allclose(out2, ref2, atol=1e-5, rtol=1e-5), "mismatch vs JAX reference (B=300)"

    print("KERNEL_OK")
</pallas_src>

<mosaic_0001>
module attributes {stable_mosaic.version = 11 : i64} {
  func.func @actor_kernel(%arg0: i32, %arg1: memref<16x128xf32, #tpu.memory_space<vmem>>, %arg2: memref<32x16xf32, #tpu.memory_space<vmem>>, %arg3: memref<32x1xf32, #tpu.memory_space<vmem>>, %arg4: memref<32x32xf32, #tpu.memory_space<vmem>>, %arg5: memref<32x1xf32, #tpu.memory_space<vmem>>, %arg6: memref<4x32xf32, #tpu.memory_space<vmem>>, %arg7: memref<4x1xf32, #tpu.memory_space<vmem>>, %arg8: memref<4x128xf32, #tpu.memory_space<vmem>>) attributes {dimension_semantics = [#tpu.dimension_semantics<parallel>], iteration_bounds = array<i64: 1>, scalar_prefetch = 0 : i64, scratch_operands = 0 : i64, tpu.core_type = #tpu.core_type<tc>, window_params = [{transform_indices = @transform_0, window_bounds = array<i64: 16, 128>}, {pipeline_mode = #tpu.pipeline_mode<synchronous>, transform_indices = @transform_1, window_bounds = array<i64: 32, 16>}, {pipeline_mode = #tpu.pipeline_mode<synchronous>, transform_indices = @transform_2, window_bounds = array<i64: 32, 1>}, {pipeline_mode = #tpu.pipeline_mode<synchronous>, transform_indices = @transform_3, window_bounds = array<i64: 32, 32>}, {pipeline_mode = #tpu.pipeline_mode<synchronous>, transform_indices = @transform_4, window_bounds = array<i64: 32, 1>}, {pipeline_mode = #tpu.pipeline_mode<synchronous>, transform_indices = @transform_5, window_bounds = array<i64: 4, 32>}, {pipeline_mode = #tpu.pipeline_mode<synchronous>, transform_indices = @transform_6, window_bounds = array<i64: 4, 1>}, {transform_indices = @transform_7, window_bounds = array<i64: 4, 128>}]} {
    %c0 = arith.constant 0 : index
    %c0_0 = arith.constant 0 : index
    %0 = vector.load %arg1[%c0, %c0_0] : memref<16x128xf32, #tpu.memory_space<vmem>>, vector<16x128xf32>
    %c0_1 = arith.constant 0 : index
    %c0_2 = arith.constant 0 : index
    %1 = vector.load %arg2[%c0_1, %c0_2] : memref<32x16xf32, #tpu.memory_space<vmem>>, vector<32x16xf32>
    %cst = arith.constant dense<0.000000e+00> : vector<32x128xf32>
    %2 = tpu.matmul %1, %0, %cst {dimension_numbers = #tpu.dot_dimension_numbers<[1], [0], [0], [1], [0, 0, 1, 1], [], []>} : vector<32x16xf32>, vector<16x128xf32>, vector<32x128xf32> -> vector<32x128xf32>
    %c0_3 = arith.constant 0 : index
    %c0_4 = arith.constant 0 : index
    %3 = vector.load %arg3[%c0_3, %c0_4] : memref<32x1xf32, #tpu.memory_space<vmem>>, vector<32x1xf32>
    %4 = vector.broadcast %3 : vector<32x1xf32> to vector<32x128xf32>
    %5 = arith.addf %2, %4 : vector<32x128xf32>
    %cst_5 = arith.constant 0.000000e+00 : f32
    %6 = vector.broadcast %cst_5 : f32 to vector<32x128xf32>
    %7 = arith.maximumf %5, %6 : vector<32x128xf32>
    %c0_6 = arith.constant 0 : index
    %c0_7 = arith.constant 0 : index
    %8 = vector.load %arg4[%c0_6, %c0_7] : memref<32x32xf32, #tpu.memory_space<vmem>>, vector<32x32xf32>
    %cst_8 = arith.constant dense<0.000000e+00> : vector<32x128xf32>
    %9 = tpu.matmul %8, %7, %cst_8 {dimension_numbers = #tpu.dot_dimension_numbers<[1], [0], [0], [1], [0, 0, 1, 1], [], []>} : vector<32x32xf32>, vector<32x128xf32>, vector<32x128xf32> -> vector<32x128xf32>
    %c0_9 = arith.constant 0 : index
    %c0_10 = arith.constant 0 : index
    %10 = vector.load %arg5[%c0_9, %c0_10] : memref<32x1xf32, #tpu.memory_space<vmem>>, vector<32x1xf32>
    %11 = vector.broadcast %10 : vector<32x1xf32> to vector<32x128xf32>
    %12 = arith.addf %9, %11 : vector<32x128xf32>
    %cst_11 = arith.constant 0.000000e+00 : f32
    %13 = vector.broadcast %cst_11 : f32 to vector<32x128xf32>
    %14 = arith.maximumf %12, %13 : vector<32x128xf32>
    %c0_12 = arith.constant 0 : index
    %c0_13 = arith.constant 0 : index
    %15 = vector.load %arg6[%c0_12, %c0_13] : memref<4x32xf32, #tpu.memory_space<vmem>>, vector<4x32xf32>
    %cst_14 = arith.constant dense<0.000000e+00> : vector<4x128xf32>
    %16 = tpu.matmul %15, %14, %cst_14 {dimension_numbers = #tpu.dot_dimension_numbers<[1], [0], [0], [1], [0, 0, 1, 1], [], []>} : vector<4x32xf32>, vector<32x128xf32>, vector<4x128xf32> -> vector<4x128xf32>
    %c0_15 = arith.constant 0 : index
    %c0_16 = arith.constant 0 : index
    %17 = vector.load %arg7[%c0_15, %c0_16] : memref<4x1xf32, #tpu.memory_space<vmem>>, vector<4x1xf32>
    %18 = vector.broadcast %17 : vector<4x1xf32> to vector<4x128xf32>
    %19 = arith.addf %16, %18 : vector<4x128xf32>
    %20 = math.tanh %19 : vector<4x128xf32>
    %cst_17 = arith.constant 2.000000e+00 : f32
    %21 = vector.broadcast %cst_17 : f32 to vector<4x128xf32>
    %22 = arith.mulf %20, %21 : vector<4x128xf32>
    %cst_18 = arith.constant 0.000000e+00 : f32
    %23 = vector.broadcast %cst_18 : f32 to vector<4x128xf32>
    %24 = arith.addf %22, %23 : vector<4x128xf32>
    %c0_19 = arith.constant 0 : index
    %c0_20 = arith.constant 0 : index
    %25 = vector.load %arg8[%c0_19, %c0_20] : memref<4x128xf32, #tpu.memory_space<vmem>>, vector<4x128xf32>
    tpu.vector_store %arg8[%c0_19, %c0_20], %24 {strides = array<i32>} : memref<4x128xf32, #tpu.memory_space<vmem>>, vector<4x128xf32>,
    return
  }
  func.func @transform_0(%arg0: i32) -> (i32, i32) {
    %c0_i32 = arith.constant 0 : i32
    %c0_i32_0 = arith.constant 0 : i32
    return %c0_i32, %arg0 : i32, i32
  }
  func.func @transform_1(%arg0: i32) -> (i32, i32) {
    %c0_i32 = arith.constant 0 : i32
    %c0_i32_0 = arith.constant 0 : i32
    %c0_i32_1 = arith.constant 0 : i32
    return %c0_i32, %c0_i32_0 : i32, i32
  }
  func.func @transform_2(%arg0: i32) -> (i32, i32) {
    %c0_i32 = arith.constant 0 : i32
    %c0_i32_0 = arith.constant 0 : i32
    %c0_i32_1 = arith.constant 0 : i32
    return %c0_i32, %c0_i32_0 : i32, i32
  }
  func.func @transform_3(%arg0: i32) -> (i32, i32) {
    %c0_i32 = arith.constant 0 : i32
    %c0_i32_0 = arith.constant 0 : i32
    %c0_i32_1 = arith.constant 0 : i32
    return %c0_i32, %c0_i32_0 : i32, i32
  }
  func.func @transform_4(%arg0: i32) -> (i32, i32) {
    %c0_i32 = arith.constant 0 : i32
    %c0_i32_0 = arith.constant 0 : i32
    %c0_i32_1 = arith.constant 0 : i32
    return %c0_i32, %c0_i32_0 : i32, i32
  }
  func.func @transform_5(%arg0: i32) -> (i32, i32) {
    %c0_i32 = arith.constant 0 : i32
    %c0_i32_0 = arith.constant 0 : i32
    %c0_i32_1 = arith.constant 0 : i32
    return %c0_i32, %c0_i32_0 : i32, i32
  }
  func.func @transform_6(%arg0: i32) -> (i32, i32) {
    %c0_i32 = arith.constant 0 : i32
    %c0_i32_0 = arith.constant 0 : i32
    %c0_i32_1 = arith.constant 0 : i32
    return %c0_i32, %c0_i32_0 : i32, i32
  }
  func.func @transform_7(%arg0: i32) -> (i32, i32) {
    %c0_i32 = arith.constant 0 : i32
    %c0_i32_0 = arith.constant 0 : i32
    return %c0_i32, %arg0 : i32, i32
  }
}

</mosaic_0001>

<bundles_post_ra>
// kernel: tpu_custom_call.1
= control target key start
LH: loop header
LB: loop body
LE: loop exit
PB: predicated region body
PF: predicated region fallthrough
CT: control target
= control target key end

     0   :  { %vm57_vm0 = vcmask 130048   ;;  %v279_v3 = vmov 0   ;;  %s393_s0 = inlined_call_operand.vmem [shape: f32[16,128], index: 0, kind: input, shape index: {}]   ;;  %s394_s1 = inlined_call_operand.vmem [shape: f32[32,16], index: 1, kind: input, shape index: {}]   ;;  %s395_s2 = inlined_call_operand.vmem [shape: f32[32,1], index: 2, kind: input, shape index: {}]   ;;  %s396_s3 = inlined_call_operand.vmem [shape: f32[32,32], index: 3, kind: input, shape index: {}]   ;;  %s397_s4 = inlined_call_operand.vmem [shape: f32[32,1], index: 4, kind: input, shape index: {}]   ;;  %s398_s5 = inlined_call_operand.vmem [shape: f32[4,32], index: 5, kind: input, shape index: {}]   ;;  %s399_s6 = inlined_call_operand.vmem [shape: f32[4,1], index: 6, kind: input, shape index: {}]   ;;  %s400_s7 = inlined_call_operand.hbm [shape: f32[4,128], index: 7, kind: output, shape index: {}]  }
   0x1   :  { %v28_v0 = vld [vmem:[%s393_s0 + $0x8] sm:$0xff]  ;;  %v27_v1 = vld [vmem:[%s393_s0] sm:$0xff]  ;;  %249 = vset.pattern.permute.xlu1 %v279_v3  ;;  %v36_v4 = vld [vmem:[%s395_s2 + $0x18] sm:$0xff]  ;;  %248 = vset.pattern.permute.xlu0 %v279_v3 }
   0x2   :  { %84 = vmatpush.msra.mxu0 %v28_v0  ;;  %v29_v2 = vld [vmem:[%s394_s1] sm:$0xff]  ;;  %v34_v5 = vld [vmem:[%s395_s2 + $0x8] sm:$0xff]  ;;  %54 = vperm.xlu0 %248, %v36_v4   ;;  %v32_v6 = vld [vmem:[%s394_s1 + $0x18] sm:$0xff] }
   0x3   :  { %44 = vperm.xlu1 %249, %v34_v5   ;;  %236 = vmatpush.msra.mxu1 %v28_v0 }
   0x4   :  { %85 = vmatpush.msra.mxu0 %v27_v1 }
   0x5   :  { %227 = vmatmul.msk.f32.vlgmr.msra.gmra.mxu0 %vm57_vm0, %v29_v2 }
   0x6   :  { %12 = vsyncpa [#allocation3], 0  ;;  %250 = vset.pattern.permute.xlu2 %v279_v3  ;;  %237 = vmatpush.msra.mxu1 %v27_v1  ;;  %v33_v7 = vld [vmem:[%s395_s2] sm:$0xff]  ;;  %v35_v8 = vld [vmem:[%s395_s2 + $0x10] sm:$0xff]  ;;  %vm131_vm1 = vcmask 261120   ;;  %s280_s11 = smov [#allocation2]  }
   0x7   :  { %230 = vmatmul.msk.f32.vlgmr.msra.gmra.mxu1 %vm57_vm0, %v32_v6  ;;  %v30_v9 = vld [vmem:[%s394_s1 + $0x8] sm:$0xff]  ;;  %v107_v10 = vld [vmem:[%s397_s4] sm:$0xff]  ;;  %v31_v12 = vld [vmem:[%s394_s1 + $0x10] sm:$0xff]  ;;  %s216_s12 = sshll.u32 %s280_s11, 4  ;;  %s218_s15 = sshll.u32 %s400_s7, 4  ;;  %s217_s12 = int_to_ptr.vmem [resolvable:$true] %s216_s12  ;;  %s219_s15 = int_to_ptr.hbm [resolvable:$true] %s218_s15 }
   0x8   :  { %v108_v11 = vld [vmem:[%s397_s4 + $0x8] sm:$0xff]  ;;  %v110_v16 = vld [vmem:[%s397_s4 + $0x18] sm:$0xff]  ;;  %v109_v21 = vld [vmem:[%s397_s4 + $0x10] sm:$0xff] }
   0x9   :  { %128 = vperm.xlu2 %250, %v110_v16   ;;  %v178_v27 = vld [vmem:[%s399_s6] sm:$0xf]  ;;  %v104_v33 = vld [vmem:[%s396_s3 + $0x8] sm:$0xff]  ;;  %v105_v34 = vld [vmem:[%s396_s3 + $0x10] sm:$0xff] }
   0xa   :  { %49 = vperm.xlu0 %248, %v35_v8   ;;  %v103_v32 = vld [vmem:[%s396_s3] sm:$0xff]  ;;  %v106_v35 = vld [vmem:[%s396_s3 + $0x18] sm:$0xff] }
   0xb   :  { %39 = vperm.xlu1 %249, %v33_v7   ;;  %v177_v52 = vld [vmem:[%s398_s5] sm:$0xf] }
   0xd   :  { %228 = vmatmul.msk.f32.gmra.mxu0 %vm57_vm0, %v30_v9 }
  0x11   :  { %123 = vperm.xlu2 %250, %v109_v21  }
  0x12   :  { %118 = vperm.xlu0 %248, %v108_v11  }
  0x13   :  { %113 = vperm.xlu1 %249, %v107_v10  }
  0x15   :  { %229 = vmatmul.msk.f32.gmra.mxu0 %vm57_vm0, %v31_v12 }
  0x19   :  { %181 = vperm.xlu2 %250, %v178_v27  }
  0x63   :  { %v129_v36 = vpop.permute.xlu2 %128 }
  0x6b   :  { %v124_v38 = vpop.permute.xlu2 %123 }
  0x73   :  { %v182_v53 = vpop.permute.xlu2 %181 }
  0x74   :  { %v55_v14 = vpop.permute.xlu0 %54 }
  0x75   :  { %v45_v18 = vpop.permute.xlu1 %44 }
  0x7c   :  { %v50_v23 = vpop.permute.xlu0 %49 }
  0x7d   :  { %v40_v22 = vpop.permute.xlu1 %39 }
  0x82   :  { %v87_v13 = vpop.f32.mrf.mxu0 }
  0x83   :  { %v88_v28 = vadd.f32 %v87_v13, %v40_v22 }
  0x84   :  { %v96_v15 = vpop.f32.mrf.mxu1  ;;  %v119_v43 = vpop.permute.xlu0 %118 }
  0x85   :  { %v97_v17 = vadd.f32 %v96_v15, %v55_v14  ;;  %v99_v31 = vmax.f32 %v88_v28, 0.0  ;;  %v114_v47 = vpop.permute.xlu1 %113 }
  0x87   :  { %v102_v19 = vmax.f32 %v97_v17, 0.0 }
  0x89   :  { %156 = vmatpush.msrb.mxu1 %v102_v19  ;;  %238 = vmatpush.msra.mxu2 %v102_v19 }
  0x8a   :  { %v90_v20 = vpop.f32.mrf.mxu0  ;;  %239 = vmatpush.msra.mxu3 %v102_v19 }
  0x8b   :  { %v91_v25 = vadd.f32 %v90_v20, %v45_v18 }
  0x8d   :  { %v100_v30 = vmax.f32 %v91_v25, 0.0 }
  0x92   :  { %v93_v24 = vpop.f32.mrf.mxu0 }
  0x93   :  { %v94_v26 = vadd.f32 %v93_v24, %v50_v23 }
  0x95   :  { %v101_v29 = vmax.f32 %v94_v26, 0.0 }
  0x97   :  { %157 = vmatpush.msrb.mxu1 %v101_v29  ;;  %240 = vmatpush.msra.mxu2 %v101_v29 }
  0x98   :  { %241 = vmatpush.msra.mxu3 %v101_v29 }
  0x99   :  { %158 = vmatpush.msrb.mxu1 %v100_v30  ;;  %242 = vmatpush.msra.mxu2 %v100_v30 }
  0x9a   :  { %243 = vmatpush.msra.mxu3 %v100_v30 }
  0x9b   :  { %159 = vmatpush.msrb.mxu1 %v99_v31  ;;  %244 = vmatpush.msra.mxu2 %v99_v31 }
  0x9c   :  { %245 = vmatpush.msra.mxu3 %v99_v31  ;;  %231 = vmatmul.msk.f32.vlgmr.msrb.gmra.mxu1 %vm131_vm1, %v103_v32 }
  0x9d   :  { %232 = vmatmul.msk.f32.vlgmr.msra.gmra.mxu2 %vm131_vm1, %v104_v33  ;;  %233 = vmatmul.msk.f32.vlgmr.msra.gmra.mxu3 %vm131_vm1, %v105_v34 }
  0xa5   :  { %234 = vmatmul.msk.f32.gmra.mxu3 %vm131_vm1, %v106_v35 }
 0x119   :  { %v161_v44 = vpop.f32.mrf.mxu1 }
 0x11a   :  { %v162_v48 = vadd.f32 %v161_v44, %v114_v47 }
 0x11c   :  { %v173_v51 = vmax.f32 %v162_v48, 0.0 }
 0x120   :  { %v167_v37 = vpop.f32.mrf.mxu3  ;;  %v164_v39 = vpop.f32.mrf.mxu2 }
 0x121   :  { %v168_v41 = vadd.f32 %v167_v37, %v124_v38  ;;  %v165_v45 = vadd.f32 %v164_v39, %v119_v43 }
 0x123   :  { %v175_v49 = vmax.f32 %v168_v41, 0.0  ;;  %v174_v50 = vmax.f32 %v165_v45, 0.0 }
 0x128   :  { %v170_v40 = vpop.f32.mrf.mxu3 }
 0x129   :  { %v171_v42 = vadd.f32 %v170_v40, %v129_v36 }
 0x12b   :  { %v176_v46 = vmax.f32 %v171_v42, 0.0 }
 0x12d   :  { %199 = vmatpush.msrb.mxu2 %v176_v46 }
 0x12f   :  { %200 = vmatpush.msrb.mxu2 %v175_v49 }
 0x131   :  { %201 = vmatpush.msrb.mxu2 %v174_v50 }
 0x133   :  { %202 = vmatpush.msrb.mxu2 %v173_v51 }
 0x134   :  { %235 = vmatmul.msk.f32.vlgmr.msrb.gmra.mxu2 %vm131_vm1, %v177_v52 }
 0x1b7   :  { %v204_v54 = vpop.f32.mrf.mxu2 }
 0x1b8   :  { %v205_v55 = vadd.f32 %v204_v54, %v182_v53 }
 0x1ba   :  { %251 = vtanh.f32 %v205_v55 }
 0x1c0   :  { %v252_v56 = vpop.eup %251 }
 0x1c1   :  { %v208_v57 = vmul.f32 2.0, %v252_v56 }
 0x1c3   :  { %210 = vst [vmem:[#allocation2] sm:$0xf] %v208_v57 }
 0x1c4   :  { %221 = dma.vmem_to_hbm [thread:$0]  %s217_s12, 64, %s219_s15, [#allocation3]  }
 0x1c5   :  { %277 = dma.done.wait [#allocation3], 64  }
 0x1c6   :  { %278 = vsyncadd [#allocation3], 4294967232 }
 0x1c7   :  { %226 = vsyncpa [#allocation3], 1 }

</bundles_post_ra>
